<compile_context>
chip_gen: v6e
topology: v6e:2x2x1
jax: 0.10.0
libtpu: 0.0.40
codegen_flags: <defaults>
</compile_context>

<pallas_src>
import jax
import jax.numpy as jnp
from jax import lax
from jax.experimental import pallas as pl
from jax.experimental.pallas import tpu as pltpu

_GROUP = 8            # sublane group size
_MXU_MAX_VOCAB = 2048  # padded-vocab gate for the one-hot MXU path
_FALLBACK_ROWS = 16    # rows gathered per grid step on the HBM-DMA fallback


def _round_up(x: int, m: int) -> int:
    return (x + m - 1) // m * m


def _vmem_capacity_bytes() -> int:
    """Per-TensorCore VMEM capacity (generation aware), with a safe fallback."""
    try:
        cap = int(pltpu.get_tpu_info().vmem_capacity_bytes)
        if cap > 0:
            return cap
    except Exception:
        pass
    return 64 << 20  # conservative default: v7x per-TC VMEM


# ----------------------------------------------------------------------------
# Path 1: small vocab -> one-hot MXU matmul (exercised by the test shape).
# ----------------------------------------------------------------------------
def _onehot_matmul_kernel(ids_ref, w_ref, out_ref):
    ids = ids_ref[...]                                       # (T, 1) int32
    T = ids.shape[0]
    V_pad = w_ref.shape[0]
    col = lax.broadcasted_iota(jnp.int32, (T, V_pad), 1)
    onehot = (ids == col).astype(w_ref.dtype)                # exact one-hot rows
    out_ref[...] = jnp.dot(
        onehot, w_ref[...],
        preferred_element_type=jnp.float32,
        precision=lax.Precision.HIGHEST,                     # exact f32 row copy
    ).astype(out_ref.dtype)


def _embedding_onehot_mxu(flat_ids, weight, T, n_pad, vmem_limit):
    n_tokens = flat_ids.shape[0]
    V, D = weight.shape
    V_pad = _round_up(V, _GROUP)
    if n_pad != n_tokens:
        flat_ids = jnp.pad(flat_ids, (0, n_pad - n_tokens))
    ids_col = flat_ids.reshape(n_pad, 1)
    w2 = weight if V_pad == V else jnp.pad(weight, ((0, V_pad - V), (0, 0)))
    n_blocks = n_pad // T

    out = pl.pallas_call(
        _onehot_matmul_kernel,
        out_shape=jax.ShapeDtypeStruct((n_pad, D), weight.dtype),
        grid=(n_blocks,),
        in_specs=[
            pl.BlockSpec((T, 1), lambda i: (i, 0)),
            # Constant block index -> table DMA'd HBM->VMEM once, stays resident.
            pl.BlockSpec((V_pad, D), lambda i: (0, 0)),
        ],
        out_specs=pl.BlockSpec((T, D), lambda i: (i, 0)),
        compiler_params=pltpu.CompilerParams(
            dimension_semantics=("parallel",),   # token blocks shard across TCs
            vmem_limit_bytes=vmem_limit,
        ),
    )(ids_col, w2)
    return out[:n_tokens]


# ----------------------------------------------------------------------------
# Path 2: medium vocab -> VMEM-resident table, grouped gather, dense stores.
# ----------------------------------------------------------------------------
def _gather_group_kernel(ids_ref, w_ref, out_ref):
    """ids_ref (1,T) SMEM; w_ref (V_pad//8, 8, D) VMEM; out_ref (T//8, 8, D)."""
    D = out_ref.shape[-1]
    n_groups = out_ref.shape[0]
    sub_iota = lax.broadcasted_iota(jnp.int32, (_GROUP, 1), 0)

    def group_body(g, carry):
        acc = jnp.zeros((_GROUP, D), out_ref.dtype)
        for t in range(_GROUP):                 # 8-wide static unroll per group
            idx = ids_ref[0, g * _GROUP + t]
            grp = w_ref[idx // _GROUP]                          # (8, D) dyn. load
            row = jnp.where(sub_iota == (idx % _GROUP), grp, 0).sum(
                axis=0, keepdims=True)                          # exact (1, D)
            acc = acc + jnp.where(sub_iota == t, row.astype(acc.dtype),
                                  jnp.zeros_like(acc))
        out_ref[g] = acc                                        # dense (8, D) store
        return carry

    lax.fori_loop(0, n_groups, group_body, 0, unroll=2)


def _embedding_gather_vmem(flat_ids, weight, T, n_pad, vmem_limit):
    n_tokens = flat_ids.shape[0]
    V, D = weight.shape
    V_pad = _round_up(V, _GROUP)
    if n_pad != n_tokens:
        flat_ids = jnp.pad(flat_ids, (0, n_pad - n_tokens))
    n_blocks = n_pad // T
    ids2 = flat_ids.reshape(n_blocks, T)
    w3 = weight if V_pad == V else jnp.pad(weight, ((0, V_pad - V), (0, 0)))
    w3 = w3.reshape(V_pad // _GROUP, _GROUP, D)

    out = pl.pallas_call(
        _gather_group_kernel,
        out_shape=jax.ShapeDtypeStruct((n_pad // _GROUP, _GROUP, D), weight.dtype),
        grid=(n_blocks,),
        in_specs=[
            # Per-block ids in SMEM (no whole-array scalar prefetch).
            pl.BlockSpec((1, T), lambda i: (i, 0),
                         memory_space=pltpu.MemorySpace.SMEM),
            # Constant block index + single buffering: 1x table footprint.
            pl.BlockSpec((V_pad // _GROUP, _GROUP, D), lambda i: (0, 0, 0),
                         pipeline_mode=pl.Buffered(1)),
        ],
        out_specs=pl.BlockSpec((T // _GROUP, _GROUP, D), lambda i: (i, 0, 0)),
        compiler_params=pltpu.CompilerParams(
            dimension_semantics=("parallel",),
            vmem_limit_bytes=vmem_limit,
        ),
    )(ids2, w3)
    return out.reshape(n_pad, D)[:n_tokens]


# ----------------------------------------------------------------------------
# Path 3: huge tables -> weight in HBM, batched row DMAs per grid step.
# ----------------------------------------------------------------------------
def _row_dma_kernel(ids_ref, w_hbm_ref, out_ref, sems):
    R = out_ref.shape[0]
    copies = []
    for r in range(R):                           # R row DMAs in flight
        idx = ids_ref[0, r]
        cp = pltpu.make_async_copy(
            w_hbm_ref.at[pl.ds(idx, 1), :],
            out_ref.at[pl.ds(r, 1), :],
            sems.at[r])
        cp.start()
        copies.append(cp)
    for cp in copies:
        cp.wait()
    # TODO(synk): double-buffer row DMAs across grid steps to fully hide HBM latency.


def _embedding_row_dma(flat_ids, weight):
    n_tokens = flat_ids.shape[0]
    V, D = weight.shape
    R = _FALLBACK_ROWS
    n_pad = _round_up(n_tokens, R)
    if n_pad != n_tokens:
        flat_ids = jnp.pad(flat_ids, (0, n_pad - n_tokens))
    n_blocks = n_pad // R
    ids2 = flat_ids.reshape(n_blocks, R)

    out = pl.pallas_call(
        _row_dma_kernel,
        out_shape=jax.ShapeDtypeStruct((n_pad, D), weight.dtype),
        grid=(n_blocks,),
        in_specs=[
            pl.BlockSpec((1, R), lambda i: (i, 0),
                         memory_space=pltpu.MemorySpace.SMEM),
            pl.BlockSpec(memory_space=pl.ANY),   # weight stays in HBM
        ],
        out_specs=pl.BlockSpec((R, D), lambda i: (i, 0)),
        scratch_shapes=[pltpu.SemaphoreType.DMA((R,))],
        compiler_params=pltpu.CompilerParams(
            dimension_semantics=("parallel",),
        ),
    )(ids2, weight)
    return out[:n_tokens]


# ----------------------------------------------------------------------------
# Public wrapper == torch.nn.Embedding(num_embeddings, embedding_dim)(indices)
# ----------------------------------------------------------------------------
def embedding_lookup(indices: jax.Array, weight: jax.Array,
                     *, block_tokens: int = 512) -> jax.Array:
    """indices: integer array of any shape; weight: (V, D); returns indices.shape + (D,)."""
    idx_shape = indices.shape
    V, D = weight.shape
    # torch.nn.Embedding raises on out-of-range ids; we clamp instead (documented).
    flat_ids = jnp.clip(indices.reshape(-1).astype(jnp.int32), 0, V - 1)
    n_tokens = int(flat_ids.shape[0])

    itemsize = jnp.dtype(weight.dtype).itemsize
    V_pad = _round_up(V, _GROUP)

    # Token block: one dense block for small inputs, else a 128-aligned tile.
    if n_tokens <= block_tokens:
        T = _round_up(n_tokens, _GROUP)
    else:
        T = _round_up(block_tokens, 128)
    n_pad = _round_up(n_tokens, T)

    # Generation-aware per-TensorCore VMEM budget (~96 MiB v5e/v6e, ~48 MiB v7x).
    cap = _vmem_capacity_bytes()
    budget = (cap * 3) // 4
    headroom = 2 << 20

    table_bytes = V_pad * D * itemsize
    out_tiles = 2 * T * D * itemsize            # double-buffered output block
    onehot_bytes = T * V_pad * itemsize
    ids_bytes = 2 * T * 128 * 4                 # (T, 1) i32 block padded to lanes

    mxu_need = 2 * table_bytes + out_tiles + onehot_bytes + ids_bytes + headroom
    gather_need = table_bytes + out_tiles + headroom   # table single-buffered

    if V_pad <= _MXU_MAX_VOCAB and mxu_need <= budget:
        vmem_limit = int(min(max(mxu_need, 16 << 20), (cap * 9) // 10))
        out_flat = _embedding_onehot_mxu(flat_ids, weight, T, n_pad, vmem_limit)
    elif gather_need <= budget:
        vmem_limit = int(min(max(gather_need + (4 << 20), 16 << 20), (cap * 9) // 10))
        out_flat = _embedding_gather_vmem(flat_ids, weight, T, n_pad, vmem_limit)
    else:
        out_flat = _embedding_row_dma(flat_ids, weight)

    return out_flat.reshape(*idx_shape, D)


def embedding_reference(indices: jax.Array, weight: jax.Array) -> jax.Array:
    return jnp.take(weight, indices.astype(jnp.int32), axis=0)


if __name__ == "__main__":
    # Small shapes consistent with the module: num_embeddings=32,
    # embedding_dim=128, index tensor of shape (batch=2, seq=8).
    num_embeddings = 32
    embedding_dim = 128
    batch, seq = 2, 8

    key = jax.random.PRNGKey(0)
    k_w, k_idx = jax.random.split(key)

    # torch.rand -> uniform [0, 1) float32
    weight = jax.random.uniform(
        k_w, (num_embeddings, embedding_dim), dtype=jnp.float32)
    x = jax.random.randint(
        k_idx, (batch, seq), 0, num_embeddings, dtype=jnp.int32)

    out = jax.block_until_ready(embedding_lookup(x, weight))
    ref = embedding_reference(x, weight)

    assert out.shape == (batch, seq, embedding_dim)
    assert out.dtype == jnp.float32
    assert jnp.allclose(out, ref, atol=1e-6, rtol=1e-6), "Pallas embedding mismatch"

    print("KERNEL_OK")
</pallas_src>

<mosaic_0001>
module attributes {stable_mosaic.version = 11 : i64} {
  func.func @_onehot_matmul_kernel(%arg0: i32, %arg1: memref<16x1xi32, #tpu.memory_space<vmem>>, %arg2: memref<32x128xf32, #tpu.memory_space<vmem>>, %arg3: memref<16x128xf32, #tpu.memory_space<vmem>>) attributes {dimension_semantics = [#tpu.dimension_semantics<parallel>], iteration_bounds = array<i64: 1>, scalar_prefetch = 0 : i64, scratch_operands = 0 : i64, tpu.core_type = #tpu.core_type<tc>, window_params = [{transform_indices = @transform_0, window_bounds = array<i64: 16, 1>}, {pipeline_mode = #tpu.pipeline_mode<synchronous>, transform_indices = @transform_1, window_bounds = array<i64: 32, 128>}, {transform_indices = @transform_2, window_bounds = array<i64: 16, 128>}]} {
    %c0 = arith.constant 0 : index
    %c0_0 = arith.constant 0 : index
    %0 = vector.load %arg1[%c0, %c0_0] : memref<16x1xi32, #tpu.memory_space<vmem>>, vector<16x1xi32>
    %1 = tpu.iota {dimensions = array<i32: 1>} : vector<16x32xi32>
    %2 = vector.broadcast %0 : vector<16x1xi32> to vector<16x32xi32>
    %3 = arith.cmpi eq, %2, %1 : vector<16x32xi32>
    %4 = arith.extui %3 : vector<16x32xi1> to vector<16x32xi32>
    %5 = arith.sitofp %4 : vector<16x32xi32> to vector<16x32xf32>
    %c0_1 = arith.constant 0 : index
    %c0_2 = arith.constant 0 : index
    %6 = vector.load %arg2[%c0_1, %c0_2] : memref<32x128xf32, #tpu.memory_space<vmem>>, vector<32x128xf32>
    %cst = arith.constant dense<0.000000e+00> : vector<16x128xf32>
    %7 = tpu.matmul %5, %6, %cst {dimension_numbers = #tpu.dot_dimension_numbers<[1], [0], [0], [1], [0, 0, 1, 1], [], []>, precision = #tpu.contract_precision<fp32>} : vector<16x32xf32>, vector<32x128xf32>, vector<16x128xf32> -> vector<16x128xf32>
    %c0_3 = arith.constant 0 : index
    %c0_4 = arith.constant 0 : index
    %8 = vector.load %arg3[%c0_3, %c0_4] : memref<16x128xf32, #tpu.memory_space<vmem>>, vector<16x128xf32>
    tpu.vector_store %arg3[%c0_3, %c0_4], %7 {strides = array<i32>} : memref<16x128xf32, #tpu.memory_space<vmem>>, vector<16x128xf32>,
    return
  }
  func.func @transform_0(%arg0: i32) -> (i32, i32) {
    %c0_i32 = arith.constant 0 : i32
    %c0_i32_0 = arith.constant 0 : i32
    return %arg0, %c0_i32 : i32, i32
  }
  func.func @transform_1(%arg0: i32) -> (i32, i32) {
    %c0_i32 = arith.constant 0 : i32
    %c0_i32_0 = arith.constant 0 : i32
    %c0_i32_1 = arith.constant 0 : i32
    return %c0_i32, %c0_i32_0 : i32, i32
  }
  func.func @transform_2(%arg0: i32) -> (i32, i32) {
    %c0_i32 = arith.constant 0 : i32
    %c0_i32_0 = arith.constant 0 : i32
    return %arg0, %c0_i32 : i32, i32
  }
}

</mosaic_0001>

<bundles_post_ra>
// kernel: tpu_custom_call.1
= control target key start
LH: loop header
LB: loop body
LE: loop exit
PB: predicated region body
PF: predicated region fallthrough
CT: control target
= control target key end

     0   :  { %7 = vsyncpa [#allocation3], 0  ;;  %s888_s0 = inlined_call_operand.vmem [shape: s32[16,1], index: 0, kind: input, shape index: {}]   ;;  %s889_s1 = inlined_call_operand.hbm [shape: f32[32,128], index: 1, kind: input, shape index: {}]   ;;  %s890_s2 = inlined_call_operand.hbm [shape: f32[16,128], index: 2, kind: output, shape index: {}]  }
   0x1   :  { %8 = vsyncpa [#allocation4], 0  ;;  %s761_s9 = smov [#allocation2]  }
   0x2   :  { %s16_s10 = sshll.u32 %s761_s9, 4  ;;  %s17_s10 = int_to_ptr.vmem [resolvable:$true] %s16_s10 }
   0x3   :  { %s725_s11 = scalar_lea.vmem %s17_s10, 512  ;;  %p730_p1 = scmp.lt.s32.totalorder %s17_s10, %s17_s10 }
   0x4   :  { %p726_p0 = scmp.ne.s32.totalorder %s17_s10, %s725_s11  ;;  %p731_p2 = scmp.lt.s32.totalorder %s725_s11, %s725_s11 }
   0x6   :  { %p732_p3 = por %p731_p2, %p730_p1 }
   0x8   :  { %p733_p4 = pnand %p732_p3, %p726_p0 }
   0xa   :  { %736 = shalt.err (!%p733_p4)
}
   0xb   :  { %s762_s12 = smov 128   ;;  %s763_s13 = smov 8  }
   0xc   :  { %22 = dma.hbm_to_vmem [thread:$0]  %s889_s1, 512, %s17_s10, [#allocation3], %s762_s12, %s762_s12, %s763_s13  }
   0xd   :  { %757 = dma.done.wait [#allocation3], 512  }
   0xe   :  { %758 = vsyncadd [#allocation3], 4294966784  ;;  %v764_v0 = vmov 0   ;;  %v26_v1 = vld [vmem:[%s888_s0] sm:$0xff]  ;;  %v45_v2 = vld [vmem:[#allocation2 + $0x18] sm:$0xff]  ;;  %v28_v27 = vlaneseq  ;;  %vm46_vm0 = vcmask 261120  }
   0xf   :  { %716 = vset.pattern.permute.xlu0 %v764_v0  ;;  %v791_v3 = vand.u32 4294901760, %v45_v2  ;;  %v44_v4 = vld [vmem:[#allocation2 + $0x10] sm:$0xff]  ;;  %v43_v5 = vld [vmem:[#allocation2 + $0x8] sm:$0xff]  ;;  %v42_v6 = vld [vmem:[#allocation2] sm:$0xff]  ;;  %v765_v30 = vmov 0.0  }
  0x10   :  { %31 = vperm.xlu0 %716, %v26_v1   ;;  %v27_v7 = vld [vmem:[%s888_s0 + $0x8] sm:$0xff]  ;;  %v796_v8 = vand.u32 4294901760, %v44_v4  ;;  %v798_v9 = vand.u32 4294901760, %v43_v5  ;;  %v800_v10 = vand.u32 4294901760, %v42_v6  ;;  %v29_v28 = vand.u32 127, %v28_v27  ;;  %s766_s0 = smov [#allocation5]  }
  0x11   :  { %v803_v11 = vsub.f32 %v45_v2, %v791_v3  ;;  %644 = vmatprep.subr.mxu0 %v791_v3  ;;  %s588_s1 = sshll.u32 %s766_s0, 4  ;;  %s589_s1 = int_to_ptr.vmem [resolvable:$true] %s588_s1 }
  0x12   :  { %v807_v12 = vsub.f32 %v44_v4, %v796_v8  ;;  %v810_v13 = vsub.f32 %v43_v5, %v798_v9  ;;  %v813_v14 = vsub.f32 %v42_v6, %v800_v10  ;;  %645 = vmatpush3.msra.mxu0 %v791_v3  ;;  %s737_s20 = scalar_lea.vmem %s589_s1, 256  ;;  %p742_p6 = scmp.lt.s32.totalorder %s589_s1, %s589_s1 }
  0x13   :  { %v817_v15 = vand.u32 4294901760, %v803_v11  ;;  %646 = vmatprep.subr.mxu0 %v796_v8  ;;  %p738_p5 = scmp.ne.s32.totalorder %s589_s1, %s737_s20  ;;  %p743_p7 = scmp.lt.s32.totalorder %s737_s20, %s737_s20 }
  0x14   :  { %34 = vperm.xlu0 %716, %v27_v7   ;;  %v821_v16 = vand.u32 4294901760, %v807_v12  ;;  %v824_v17 = vand.u32 4294901760, %v810_v13  ;;  %v827_v18 = vand.u32 4294901760, %v813_v14  ;;  %647 = vmatpush3.msra.mxu0 %v796_v8 }
  0x15   :  { %v170_v19 = vsub.f32 %v803_v11, %v817_v15  ;;  %648 = vmatprep.subr.mxu0 %v798_v9  ;;  %p744_p8 = por %p743_p7, %p742_p6 }
  0x16   :  { %v177_v20 = vsub.f32 %v807_v12, %v821_v16  ;;  %v184_v21 = vsub.f32 %v810_v13, %v824_v17  ;;  %649 = vmatpush3.msra.mxu0 %v798_v9  ;;  %v191_v23 = vsub.f32 %v813_v14, %v827_v18 }
  0x17   :  { %v171_v22 = vand.u32 4294901760, %v170_v19  ;;  %650 = vmatprep.subr.mxu0 %v800_v10  ;;  %p745_p9 = pnand %p744_p8, %p738_p5 }
  0x18   :  { %v178_v24 = vand.u32 4294901760, %v177_v20  ;;  %651 = vmatpush3.msra.mxu0 %v800_v10  ;;  %v185_v25 = vand.u32 4294901760, %v184_v21  ;;  %v192_v26 = vand.u32 4294901760, %v191_v23 }
  0x19   :  { %655 = vmatprep.subr.mxu1 %v171_v22  ;;  %666 = vmatprep.subr.mxu0 %v803_v11 }
  0x1a   :  { %656 = vmatpush3.msra.mxu1 %v171_v22 }
  0x1b   :  { %657 = vmatprep.subr.mxu1 %v178_v24 }
  0x1c   :  { %658 = vmatpush3.msra.mxu1 %v178_v24 }
  0x1d   :  { %659 = vmatprep.subr.mxu1 %v185_v25 }
  0x1e   :  { %660 = vmatpush3.msra.mxu1 %v185_v25 }
  0x1f   :  { %661 = vmatprep.subr.mxu1 %v192_v26 }
  0x20   :  { %662 = vmatpush3.msra.mxu1 %v192_v26 }
  0x21   :  { %677 = vmatprep.subr.mxu1 %v791_v3 }
  0x8b   :  { %v32_v29 = vpop.permute.xlu0 %31 }
  0x8c   :  { %vm36_vm1 = vcmp.eq.s32.totalorder %v32_v29, %v29_v28 }
  0x8d   :  { %v600_v31 = vsel %vm36_vm1, 1.0, %v765_v30 }
  0x8e   :  { %v48_v32 = vsel %vm46_vm0, %v600_v31, 0  ;;  %663 = vmatprep.mubr.msk.f32.mxu1 %vm46_vm0, %v600_v31 }
  0x8f   :  { %v123_v33 = vsub.f32 %v48_v32, %v48_v32  ;;  %v35_v34 = vpop.permute.xlu0 %34 }
  0x90   :  { %vm37_vm2 = vcmp.eq.s32.totalorder %v35_v34, %v29_v28 }
  0x91   :  { %v601_v35 = vsel %vm37_vm2, 1.0, %v765_v30  ;;  %v124_v36 = vand.u32 4294901760, %v123_v33 }
  0x92   :  { %v51_v37 = vsel %vm46_vm0, %v601_v35, 0  ;;  %664 = vmatmul.mubr.msk.f32.vlgmr.msra.gmra.mxu1 %vm46_vm0, %v601_v35 }
  0x93   :  { %v133_v38 = vsub.f32 %v51_v37, %v51_v37  ;;  %678 = vmatpush3.msra.mxu1 %v791_v3  ;;  %685 = vmatprep.mubr.f32.mxu1 %v124_v36  ;;  %v125_v39 = vsub.f32 %v123_v33, %v124_v36 }
  0x94   :  { %679 = vmatprep.subr.mxu1 %v796_v8 }
  0x95   :  { %680 = vmatpush3.msra.mxu1 %v796_v8  ;;  %v126_v40 = vand.u32 4294901760, %v125_v39  ;;  %v134_v41 = vand.u32 4294901760, %v133_v38 }
  0x96   :  { %681 = vmatprep.subr.mxu1 %v798_v9 }
  0x97   :  { %682 = vmatpush3.msra.mxu1 %v798_v9  ;;  %652 = vmatprep.mubr.f32.mxu0 %v126_v40  ;;  %v135_v42 = vsub.f32 %v133_v38, %v134_v41 }
  0x98   :  { %683 = vmatprep.subr.mxu1 %v800_v10 }
  0x99   :  { %684 = vmatpush3.msra.mxu1 %v800_v10  ;;  %v136_v43 = vand.u32 4294901760, %v135_v42 }
  0x9a   :  { %686 = vmatmul.mubr.f32.vlgmr.msra.gmra.mxu1 %v134_v41  ;;  %699 = vmatprep.subr.mxu1 %v791_v3 }
  0x9b   :  { %700 = vmatpush3.msra.mxu1 %v791_v3  ;;  %707 = vmatprep.mubr.msk.f32.mxu1 %vm46_vm0, %v600_v31 }
  0x9c   :  { %653 = vmatmul.mubr.f32.vlgmr.msra.gmra.mxu0 %v136_v43  ;;  %701 = vmatprep.subr.mxu1 %v796_v8 }
  0x9d   :  { %667 = vmatpush3.msra.mxu0 %v803_v11  ;;  %674 = vmatprep.mubr.f32.mxu0 %v123_v33 }
  0x9e   :  { %668 = vmatprep.subr.mxu0 %v807_v12  ;;  %702 = vmatpush3.msra.mxu1 %v796_v8 }
  0x9f   :  { %669 = vmatpush3.msra.mxu0 %v807_v12  ;;  %703 = vmatprep.subr.mxu1 %v798_v9 }
  0xa0   :  { %670 = vmatprep.subr.mxu0 %v810_v13  ;;  %704 = vmatpush3.msra.mxu1 %v798_v9 }
  0xa1   :  { %671 = vmatpush3.msra.mxu0 %v810_v13  ;;  %705 = vmatprep.subr.mxu1 %v800_v10 }
  0xa2   :  { %672 = vmatprep.subr.mxu0 %v813_v14  ;;  %706 = vmatpush3.msra.mxu1 %v800_v10 }
  0xa3   :  { %673 = vmatpush3.msra.mxu0 %v813_v14  ;;  %708 = vmatmul.mubr.msk.f32.vlgmr.msra.gmra.mxu1 %vm46_vm0, %v601_v35 }
  0xa4   :  { %675 = vmatmul.mubr.f32.vlgmr.msra.gmra.mxu0 %v133_v38  ;;  %688 = vmatprep.subr.mxu0 %v817_v15 }
  0xa5   :  { %689 = vmatpush3.msra.mxu0 %v817_v15  ;;  %696 = vmatprep.mubr.msk.f32.mxu0 %vm46_vm0, %v600_v31 }
  0xa6   :  { %690 = vmatprep.subr.mxu0 %v821_v16 }
  0xa7   :  { %691 = vmatpush3.msra.mxu0 %v821_v16 }
  0xa8   :  { %692 = vmatprep.subr.mxu0 %v824_v17 }
  0xa9   :  { %693 = vmatpush3.msra.mxu0 %v824_v17 }
  0xaa   :  { %694 = vmatprep.subr.mxu0 %v827_v18 }
  0xab   :  { %695 = vmatpush3.msra.mxu0 %v827_v18 }
  0xac   :  { %697 = vmatmul.mubr.msk.f32.vlgmr.msra.gmra.mxu0 %vm46_vm0, %v601_v35 }
 0x152   :  { %v665_v45 = vpop.f32.mrf.mxu1 }
 0x154   :  { %v229_v47 = vpop.f32.mrf.mxu1 }
 0x15a   :  { %v687_v50 = vpop.f32.mrf.mxu1 }
 0x15c   :  { %v654_v44 = vpop.f32.mrf.mxu0  ;;  %v399_v55 = vpop.f32.mrf.mxu1 }
 0x15d   :  { %v236_v49 = vadd.f32 %v665_v45, %v654_v44 }
 0x15e   :  { %v128_v46 = vpop.f32.mrf.mxu0 }
 0x15f   :  { %v230_v52 = vadd.f32 %v229_v47, %v128_v46 }
 0x163   :  { %v709_v57 = vpop.f32.mrf.mxu1 }
 0x164   :  { %v676_v48 = vpop.f32.mrf.mxu0 }
 0x165   :  { %v323_v53 = vadd.f32 %v676_v48, %v236_v49  ;;  %v571_v0 = vpop.f32.mrf.mxu1 }
 0x166   :  { %v315_v51 = vpop.f32.mrf.mxu0 }
 0x167   :  { %v316_v54 = vadd.f32 %v315_v51, %v230_v52  ;;  %v408_v56 = vadd.f32 %v687_v50, %v323_v53 }
 0x169   :  { %v400_v60 = vadd.f32 %v399_v55, %v316_v54 }
 0x16c   :  { %v698_v58 = vpop.f32.mrf.mxu0 }
 0x16d   :  { %v497_v59 = vadd.f32 %v698_v58, %v408_v56 }
 0x16e   :  { %v490_v61 = vpop.f32.mrf.mxu0 }
 0x16f   :  { %v578_v62 = vadd.f32 %v709_v57, %v497_v59  ;;  %v491_v63 = vadd.f32 %v490_v61, %v400_v60 }
 0x171   :  { %582 = vst [vmem:[#allocation5 + $0x8] sm:$0xff] %v578_v62  ;;  %v572_v1 = vadd.f32 %v571_v0, %v491_v63 }
 0x173   :  { %581 = vst [vmem:[#allocation5] sm:$0xff] %v572_v1 }
 0x174   :  { %748 = shalt.err (!%p745_p9)
}
 0x175   :  { %594 = dma.vmem_to_hbm [thread:$0]  %s589_s1, 256, %s890_s2, [#allocation4], %s762_s12, %s762_s12, %s763_s13  }
 0x176   :  { %759 = dma.done.wait [#allocation4], 256  }
 0x177   :  { %760 = vsyncadd [#allocation4], 4294967040 }
 0x178   :  { %598 = vsyncpa [#allocation3], 1 }
 0x179   :  { %599 = vsyncpa [#allocation4], 1 }

</bundles_post_ra>
